<compile_context>
chip_gen: v5e
topology: v5e:2x2
jax: 0.10.0
libtpu: 0.0.40
codegen_flags: <defaults>
</compile_context>

<pallas_src>
import jax
import jax.numpy as jnp
import numpy as np
from jax.scipy.linalg import eigh_tridiagonal
from jax.experimental import pallas as pl
from jax.experimental.pallas import tpu as pltpu


def _round_up(n, m):
    return ((n + m - 1) // m) * m


# ----------------------------------------------------------------------------
# Pallas kernel 1: fused tridiagonal matvec + Rayleigh-quotient reductions.
#   Inputs are (1, Npad) lane-dense f32 rows: diag d, off-diagonal e (e[i]
#   couples sites i and i+1; zero-padded from index n-1 on), vector v
#   (zero-padded from index n on).  The neighbor shift is an XLU lane rotate;
#   the wrapped element is harmless because e is zero at the wrap position.
#   Outputs <v, H v> and <v, v> go to SMEM (natural home for reduction
#   scalars; avoids a masked 1-lane vector store).
# ----------------------------------------------------------------------------
def _rq_kernel(d_ref, e_ref, v_ref, out_ref):
    d = d_ref[...]
    e = e_ref[...]
    v = v_ref[...]
    npad = v.shape[-1]
    # v_next[i] = v[i + 1]; the wraparound term is killed by e[npad - 1] == 0.
    v_next = pltpu.roll(v, shift=npad - 1, axis=1)
    cross = jnp.sum(e * v * v_next)          # sum_i e_i v_i v_{i+1}
    out_ref[0, 0] = jnp.sum(d * v * v) + 2.0 * cross   # <v, H v>
    out_ref[0, 1] = jnp.sum(v * v)                      # <v, v>


def rayleigh_quotient(diag, off, v):
    """Return (<v,Hv>, <v,v>) for the implicit tridiagonal H in one Pallas pass."""
    n = diag.shape[0]
    npad = _round_up(n, 128)
    dpad = jnp.zeros((1, npad), jnp.float32).at[0, :n].set(diag)
    epad = jnp.zeros((1, npad), jnp.float32).at[0, : n - 1].set(off)
    vpad = jnp.zeros((1, npad), jnp.float32).at[0, :n].set(v)
    out = pl.pallas_call(
        _rq_kernel,
        out_shape=jax.ShapeDtypeStruct((1, 2), jnp.float32),
        in_specs=[
            pl.BlockSpec((1, npad), lambda: (0, 0)),
            pl.BlockSpec((1, npad), lambda: (0, 0)),
            pl.BlockSpec((1, npad), lambda: (0, 0)),
        ],
        out_specs=pl.BlockSpec(memory_space=pltpu.MemorySpace.SMEM),
    )(dpad, epad, vpad)
    return out[0, 0], out[0, 1]


# ----------------------------------------------------------------------------
# Pallas kernel 2: fused normalization + loss.
#   loss = sum_i |psi_i * t_i| with psi = w / ||w||, in a single pass:
#   two reductions + one rsqrt, scalar result to SMEM.
# ----------------------------------------------------------------------------
def _loss_kernel(w_ref, t_ref, out_ref):
    w = w_ref[...]
    t = t_ref[...]
    ss = jnp.sum(w * w)
    s_abs = jnp.sum(jnp.abs(w * t))
    out_ref[0, 0] = s_abs * jax.lax.rsqrt(ss)


def normalized_abs_dot(w, target):
    n = w.shape[0]
    npad = _round_up(n, 128)
    rows = npad // 128   # sublane-dense whenever npad >= 1024; lane-dense always
    wpad = jnp.zeros((npad,), jnp.float32).at[:n].set(w.astype(jnp.float32))
    tpad = jnp.zeros((npad,), jnp.float32).at[:n].set(target.astype(jnp.float32))
    out = pl.pallas_call(
        _loss_kernel,
        out_shape=jax.ShapeDtypeStruct((1, 1), jnp.float32),
        in_specs=[
            pl.BlockSpec((rows, 128), lambda: (0, 0)),
            pl.BlockSpec((rows, 128), lambda: (0, 0)),
        ],
        out_specs=pl.BlockSpec(memory_space=pltpu.MemorySpace.SMEM),
    )(wpad.reshape(rows, 128), tpad.reshape(rows, 128))
    return out[0, 0]


# ----------------------------------------------------------------------------
# Tridiagonal ground-state solve (no dense H, no dense eigh).
# ----------------------------------------------------------------------------
def _thomas_solve(d, e, b):
    """Solve T x = b for T symmetric tridiagonal (diag d (n,), offdiag e (n-1,)).

    TODO(synk): the Thomas recurrence is inherently sequential (scalar carry);
    it is kept as a lax.scan rather than forced into a pointless Pallas kernel.
    """
    tiny = 1e-6  # pivot clamp: keeps the near-singular shifted solve finite
    lower = jnp.concatenate([jnp.zeros((1,), jnp.float32), e])   # T[i, i-1]
    upper = jnp.concatenate([e, jnp.zeros((1,), jnp.float32)])   # T[i, i+1]

    def fwd(carry, inp):
        cp_prev, dp_prev = carry
        a_i, b_i, c_i, r_i = inp
        denom = b_i - a_i * cp_prev
        denom = jnp.where(jnp.abs(denom) < tiny,
                          jnp.where(denom >= 0, tiny, -tiny), denom)
        cp = c_i / denom
        dp = (r_i - a_i * dp_prev) / denom
        return (cp, dp), (cp, dp)

    _, (cps, dps) = jax.lax.scan(
        fwd, (jnp.float32(0.0), jnp.float32(0.0)), (lower, d, upper, b))

    def bwd(x_next, inp):
        cp_i, dp_i = inp
        x_i = dp_i - cp_i * x_next
        return x_i, x_i

    _, xs = jax.lax.scan(bwd, jnp.float32(0.0), (cps, dps), reverse=True)
    return xs


def _ground_state(potential, inv_h2, num_sweeps=3):
    n = potential.shape[0]
    diag = potential.astype(jnp.float32) + inv_h2
    off = jnp.full((n - 1,), -0.5 * inv_h2, jnp.float32)

    # Ground-state eigenvalue via Sturm-sequence bisection on the implicit
    # tridiagonal H (O(N^2) vectorized instead of O(N^3) dense eigh).
    # TODO(synk): the bisection itself is plain JAX; it has no natural Pallas
    # formulation.
    lam0 = eigh_tridiagonal(diag, off, eigvals_only=True)[0]

    # Shifted inverse / Rayleigh-quotient iteration.  The uniform positive
    # start vector is guaranteed a nonzero overlap with the (positive) ground
    # state; the bisection shift gives ~1/|lam0 - E0| amplification in sweep 1.
    v = jnp.full((n,), 1.0, jnp.float32) * jax.lax.rsqrt(jnp.float32(n))
    sigma = lam0
    w = v
    for sweep in range(num_sweeps):
        w = _thomas_solve(diag - sigma, off, v)
        if sweep == num_sweeps - 1:
            break
        v = w * jax.lax.rsqrt(jnp.sum(w * w))
        vty, vtv = rayleigh_quotient(diag, off, v)   # Pallas fused matvec+reduce
        sigma = vty / vtv
    return w   # un-normalized; the loss kernel folds in the normalization


@jax.jit
def _forward(potential, inv_h2, target):
    w = _ground_state(potential, inv_h2)
    return normalized_abs_dot(w, target)


# ----------------------------------------------------------------------------
# Module-equivalent wrapper
# ----------------------------------------------------------------------------
class Schrodinger1D:
    def __init__(self, xmesh):
        self.xmesh = jnp.asarray(xmesh, jnp.float32)
        # nn.Parameter(xmesh ** 2) -> deterministic init from xmesh
        self.potential = self.xmesh ** 2
        # Same uniform-mesh assumption the PyTorch module makes (h from the
        # first spacing).  TODO(synk): silently wrong for a non-uniform mesh.
        h = self.xmesh[1] - self.xmesh[0]
        self.inv_h2 = (1.0 / (h * h)).astype(jnp.float32)

    def forward(self, target):
        return _forward(self.potential, self.inv_h2,
                        jnp.asarray(target, jnp.float32))


if __name__ == "__main__":
    nmesh = 128  # multiple of 128 -> lane-aligned (other sizes are zero-padded)
    xmesh = jnp.linspace(-5.0, 5.0, nmesh, dtype=jnp.float32)

    key = jax.random.PRNGKey(0)
    target = jax.random.normal(key, (nmesh,), dtype=jnp.float32)

    model = Schrodinger1D(xmesh)
    loss = jax.block_until_ready(model.forward(target))

    assert loss.shape == ()
    assert bool(jnp.isfinite(loss))

    # Sanity check against a float64 dense-eigh reference on the host.
    # Tolerance reflects the attainable f32 accuracy of ANY single-precision
    # eigensolve here (~eps * ||H|| / gap ~ 1e-4), not algorithmic error.
    x64 = np.asarray(xmesh, np.float64)
    h2 = (x64[1] - x64[0]) ** 2
    H_ref = (np.diag(x64 ** 2 + 1.0 / h2)
             - np.diag(np.full(nmesh - 1, 0.5 / h2), 1)
             - np.diag(np.full(nmesh - 1, 0.5 / h2), -1))
    _, psi_ref = np.linalg.eigh(H_ref)
    loss_ref = float(np.sum(np.abs(psi_ref[:, 0] * np.asarray(target, np.float64))))
    assert abs(float(loss) - loss_ref) <= 5e-3 * max(1.0, abs(loss_ref)), \
        (float(loss), loss_ref)

    print("KERNEL_OK")
</pallas_src>

<mosaic_0001>
module attributes {stable_mosaic.version = 11 : i64} {
  func.func @_rq_kernel(%arg0: memref<1x128xf32, #tpu.memory_space<vmem>>, %arg1: memref<1x128xf32, #tpu.memory_space<vmem>>, %arg2: memref<1x128xf32, #tpu.memory_space<vmem>>, %arg3: memref<1x2xf32, #tpu.memory_space<smem>>) attributes {dimension_semantics = [], scalar_prefetch = 0 : i64, scratch_operands = 0 : i64, tpu.core_type = #tpu.core_type<tc>} {
    %c0 = arith.constant 0 : index
    %c0_0 = arith.constant 0 : index
    %0 = vector.load %arg0[%c0, %c0_0] : memref<1x128xf32, #tpu.memory_space<vmem>>, vector<1x128xf32>
    %c0_1 = arith.constant 0 : index
    %c0_2 = arith.constant 0 : index
    %1 = vector.load %arg1[%c0_1, %c0_2] : memref<1x128xf32, #tpu.memory_space<vmem>>, vector<1x128xf32>
    %c0_3 = arith.constant 0 : index
    %c0_4 = arith.constant 0 : index
    %2 = vector.load %arg2[%c0_3, %c0_4] : memref<1x128xf32, #tpu.memory_space<vmem>>, vector<1x128xf32>
    %c127_i32 = arith.constant 127 : i32
    %3 = tpu.dynamic_rotate %2 by %c127_i32 dim 1 : vector<1x128xf32>, i32 -> vector<1x128xf32>
    %4 = arith.mulf %1, %2 : vector<1x128xf32>
    %5 = arith.mulf %4, %3 : vector<1x128xf32>
    %6 = vector.shape_cast %5 : vector<1x128xf32> to vector<1x1x128xf32>
    %cst = arith.constant dense<0.000000e+00> : vector<1xf32>
    %7 = vector.multi_reduction <add>, %6, %cst [1, 2] : vector<1x1x128xf32> to vector<1xf32>
    %8 = vector.shape_cast %7 : vector<1xf32> to vector<1x1x1xf32>
    %9 = vector.extract %8[0, 0, 0] : f32 from vector<1x1x1xf32>
    %10 = arith.mulf %0, %2 : vector<1x128xf32>
    %11 = arith.mulf %10, %2 : vector<1x128xf32>
    %12 = vector.shape_cast %11 : vector<1x128xf32> to vector<1x1x128xf32>
    %cst_5 = arith.constant dense<0.000000e+00> : vector<1xf32>
    %13 = vector.multi_reduction <add>, %12, %cst_5 [1, 2] : vector<1x1x128xf32> to vector<1xf32>
    %14 = vector.shape_cast %13 : vector<1xf32> to vector<1x1x1xf32>
    %15 = vector.extract %14[0, 0, 0] : f32 from vector<1x1x1xf32>
    %cst_6 = arith.constant 2.000000e+00 : f32
    %16 = arith.mulf %cst_6, %9 : f32
    %17 = arith.addf %15, %16 : f32
    %c0_7 = arith.constant 0 : index
    %c0_8 = arith.constant 0 : index
    %18 = memref.load %arg3[%c0_7, %c0_8] : memref<1x2xf32, #tpu.memory_space<smem>>
    memref.store %17, %arg3[%c0_7, %c0_8] : memref<1x2xf32, #tpu.memory_space<smem>>
    %19 = arith.mulf %2, %2 : vector<1x128xf32>
    %20 = vector.shape_cast %19 : vector<1x128xf32> to vector<1x1x128xf32>
    %cst_9 = arith.constant dense<0.000000e+00> : vector<1xf32>
    %21 = vector.multi_reduction <add>, %20, %cst_9 [1, 2] : vector<1x1x128xf32> to vector<1xf32>
    %22 = vector.shape_cast %21 : vector<1xf32> to vector<1x1x1xf32>
    %23 = vector.extract %22[0, 0, 0] : f32 from vector<1x1x1xf32>
    %c0_10 = arith.constant 0 : index
    %c1 = arith.constant 1 : index
    %24 = memref.load %arg3[%c0_10, %c1] : memref<1x2xf32, #tpu.memory_space<smem>>
    memref.store %23, %arg3[%c0_10, %c1] : memref<1x2xf32, #tpu.memory_space<smem>>
    return
  }
}

module attributes {stable_mosaic.version = 11 : i64} {
  func.func @_loss_kernel(%arg0: memref<1x128xf32, #tpu.memory_space<vmem>>, %arg1: memref<1x128xf32, #tpu.memory_space<vmem>>, %arg2: memref<1x1xf32, #tpu.memory_space<smem>>) attributes {dimension_semantics = [], scalar_prefetch = 0 : i64, scratch_operands = 0 : i64, tpu.core_type = #tpu.core_type<tc>} {
    %c0 = arith.constant 0 : index
    %c0_0 = arith.constant 0 : index
    %0 = vector.load %arg0[%c0, %c0_0] : memref<1x128xf32, #tpu.memory_space<vmem>>, vector<1x128xf32>
    %c0_1 = arith.constant 0 : index
    %c0_2 = arith.constant 0 : index
    %1 = vector.load %arg1[%c0_1, %c0_2] : memref<1x128xf32, #tpu.memory_space<vmem>>, vector<1x128xf32>
    %2 = arith.mulf %0, %0 : vector<1x128xf32>
    %3 = vector.shape_cast %2 : vector<1x128xf32> to vector<1x1x128xf32>
    %cst = arith.constant dense<0.000000e+00> : vector<1xf32>
    %4 = vector.multi_reduction <add>, %3, %cst [1, 2] : vector<1x1x128xf32> to vector<1xf32>
    %5 = vector.shape_cast %4 : vector<1xf32> to vector<1x1x1xf32>
    %6 = vector.extract %5[0, 0, 0] : f32 from vector<1x1x1xf32>
    %7 = arith.mulf %0, %1 : vector<1x128xf32>
    %8 = math.absf %7 : vector<1x128xf32>
    %9 = vector.shape_cast %8 : vector<1x128xf32> to vector<1x1x128xf32>
    %cst_3 = arith.constant dense<0.000000e+00> : vector<1xf32>
    %10 = vector.multi_reduction <add>, %9, %cst_3 [1, 2] : vector<1x1x128xf32> to vector<1xf32>
    %11 = vector.shape_cast %10 : vector<1xf32> to vector<1x1x1xf32>
    %12 = vector.extract %11[0, 0, 0] : f32 from vector<1x1x1xf32>
    %13 = math.rsqrt %6 : f32
    %14 = arith.mulf %12, %13 : f32
    %c0_4 = arith.constant 0 : index
    %c0_5 = arith.constant 0 : index
    %15 = memref.load %arg2[%c0_4, %c0_5] : memref<1x1xf32, #tpu.memory_space<smem>>
    memref.store %14, %arg2[%c0_4, %c0_5] : memref<1x1xf32, #tpu.memory_space<smem>>
    return
  }
}

</mosaic_0001>

<bundles_post_ra>
// kernel: _forward.3
= control target key start
LH: loop header
LB: loop body
LE: loop exit
PB: predicated region body
PF: predicated region fallthrough
CT: control target
= control target key end

     0   :  { %s99_s16 = smov 127   ;;  %s133_s0 = inlined_call_operand.vmem [shape: f32[1,128], index: 0, kind: input, shape index: {}]   ;;  %s134_s1 = inlined_call_operand.vmem [shape: f32[1,128], index: 1, kind: input, shape index: {}]   ;;  %s135_s2 = inlined_call_operand.vmem [shape: f32[1,128], index: 2, kind: input, shape index: {}]   ;;  %s136_s3 = inlined_call_operand.vmem [shape: f32[1,2], index: 3, kind: output, shape index: {}]  }
   0x1   :  { %v17_v0 = vld [vmem:[%s135_s2] sm:$0x1] }
   0x2   :  { %v15_v1 = vld [vmem:[%s133_s0] sm:$0x1]  ;;  %18 = vrot.lane.b32.xlu0 %v17_v0, %s99_s16 }
   0x3   :  { %v33_v2 = vmul.f32 %v17_v0, %v15_v1 }
   0x4   :  { %8 = vsyncpa [#allocation3], 0  ;;  %vm22_vm0 = vcmask 1040384   ;;  %v49_v5 = vmul.f32 %v17_v0, %v17_v0  ;;  %v16_v7 = vld [vmem:[%s134_s1] sm:$0x1]  ;;  %s67_s19 = sshll.u32 %s136_s3, 4  ;;  %s68_s19 = int_to_ptr.vmem [resolvable:$true] %s67_s19 }
   0x5   :  { %v34_v3 = vmul.f32 %v33_v2, %v17_v0  ;;  %v20_v8 = vmul.f32 %v17_v0, %v16_v7  ;;  %s100_s24 = smov [#allocation2]  }
   0x6   :  { %v50_v6 = vsel %vm22_vm0, %v49_v5, 0.0 }
   0x7   :  { %v35_v4 = vsel %vm22_vm0, %v34_v3, 0.0 }
   0x8   :  { %36 = vadd.xlane.f32.xlu1 %v35_v4 }
  0x10   :  { %51 = vadd.xlane.f32.xlu1 %v50_v6 }
  0x74   :  { %v19_v9 = vpop.permute.xlu0 %18 }
  0x75   :  { %v21_v10 = vmul.f32 %v20_v8, %v19_v9 }
  0x77   :  { %v23_v11 = vsel %vm22_vm0, %v21_v10, 0.0 }
  0x78   :  { %24 = vadd.xlane.f32.xlu0 %v23_v11 }
  0x7b   :  { %v37_v12 = vpop.xlane.xlu1 %36 }
  0x7c   :  { %v38_v14 = vrot.slane %v37_v12, 4 }
  0x7e   :  { %v39_v16 = vadd.f32 %v38_v14, %v37_v12 }
  0x80   :  { %v40_v18 = vrot.slane %v39_v16, 2 }
  0x82   :  { %v41_v23 = vadd.f32 %v40_v18, %v39_v16 }
  0x83   :  { %v52_v13 = vpop.xlane.xlu1 %51 }
  0x84   :  { %v53_v15 = vrot.slane %v52_v13, 4  ;;  %v42_v27 = vrot.slane %v41_v23, 1 }
  0x86   :  { %v54_v17 = vadd.f32 %v53_v15, %v52_v13  ;;  %v43_v31 = vadd.f32 %v42_v27, %v41_v23 }
  0x88   :  { %v55_v20 = vrot.slane %v54_v17, 2 }
  0x8a   :  { %v56_v24 = vadd.f32 %v55_v20, %v54_v17 }
  0x8c   :  { %v57_v29 = vrot.slane %v56_v24, 1 }
  0x8e   :  { %v58_v32 = vadd.f32 %v57_v29, %v56_v24 }
  0xeb   :  { %v25_v19 = vpop.xlane.xlu0 %24 }
  0xec   :  { %v26_v21 = vrot.slane %v25_v19, 4 }
  0xee   :  { %v27_v22 = vadd.f32 %v26_v21, %v25_v19 }
  0xf0   :  { %v28_v25 = vrot.slane %v27_v22, 2 }
  0xf2   :  { %v29_v26 = vadd.f32 %v28_v25, %v27_v22 }
  0xf4   :  { %v30_v28 = vrot.slane %v29_v26, 1 }
  0xf6   :  { %v31_v30 = vadd.f32 %v30_v28, %v29_v26 }
  0xf8   :  { %77 = vpush %v31_v30 }
  0xf9   :  { %79 = vpush %v43_v31 }
  0xfa   :  { %81 = vpush %v58_v32 }
 0x129   :  { %s78_s0 = spop %77 }
 0x12a   :  { %s45_s20 = smul.f32 2.0, %s78_s0  ;;  %s80_s21 = spop %79 }
 0x12b   :  { %s82_s22 = spop %81 }
 0x12c   :  { %s46_s23 = sadd.f32 %s80_s21, %s45_s20 }
 0x12d   :  { %61 = sst [smem:[#allocation2 + $0x1]] %s82_s22 }
 0x12e   :  { %48 = sst [smem:[#allocation2]] %s46_s23 }
 0x12f   :  { %70 = dma.smem_to_vmem %s100_s24, 16, %s68_s19, [#allocation3]  }
 0x130   :  { %97 = dma.done.wait [#allocation3], 16  }
 0x131   :  { %98 = vsyncadd [#allocation3], 4294967280 }
 0x132   :  { %75 = sfence }
 0x133   :  { %76 = vsyncpa [#allocation3], 1 }

// kernel: _forward.5
= control target key start
LH: loop header
LB: loop body
LE: loop exit
PB: predicated region body
PF: predicated region fallthrough
CT: control target
= control target key end

     0   :  { %vm15_vm0 = vcmask 1040384   ;;  %s116_s0 = inlined_call_operand.vmem [shape: f32[1,128], index: 0, kind: input, shape index: {}]   ;;  %s117_s1 = inlined_call_operand.vmem [shape: f32[1,128], index: 1, kind: input, shape index: {}]   ;;  %s118_s2 = inlined_call_operand.hbm [shape: f32[1,1], index: 2, kind: output, shape index: {}]  }
   0x1   :  { %v12_v0 = vld [vmem:[%s116_s0] sm:$0x1] }
   0x2   :  { %v13_v1 = vld [vmem:[%s117_s1] sm:$0x1]  ;;  %v14_v2 = vmul.f32 %v12_v0, %v12_v0 }
   0x3   :  { %v26_v3 = vmul.f32 %v13_v1, %v12_v0 }
   0x4   :  { %7 = vsyncpa [#allocation3], 0  ;;  %v16_v4 = vsel %vm15_vm0, %v14_v2, 0.0  ;;  %s58_s14 = sshll.u32 %s118_s2, 4  ;;  %s91_s18 = smov [#allocation2]   ;;  %s59_s14 = int_to_ptr.hbm [resolvable:$true] %s58_s14 }
   0x5   :  { %17 = vadd.xlane.f32.xlu0 %v16_v4  ;;  %v27_v5 = vand.u32 2147483647, %v26_v3 }
   0x7   :  { %v28_v6 = vsel %vm15_vm0, %v27_v5, 0.0 }
   0xd   :  { %29 = vadd.xlane.f32.xlu0 %v28_v6 }
  0x78   :  { %v18_v7 = vpop.xlane.xlu0 %17 }
  0x79   :  { %v19_v8 = vrot.slane %v18_v7, 4 }
  0x7b   :  { %v20_v9 = vadd.f32 %v19_v8, %v18_v7 }
  0x7d   :  { %v21_v10 = vrot.slane %v20_v9, 2 }
  0x7f   :  { %v22_v11 = vadd.f32 %v21_v10, %v20_v9 }
  0x80   :  { %v30_v14 = vpop.xlane.xlu0 %29 }
  0x81   :  { %v23_v12 = vrot.slane %v22_v11, 1  ;;  %v31_v15 = vrot.slane %v30_v14, 4 }
  0x83   :  { %v24_v13 = vadd.f32 %v23_v12, %v22_v11  ;;  %v32_v16 = vadd.f32 %v31_v15, %v30_v14 }
  0x85   :  { %68 = vpush %v24_v13  ;;  %v33_v17 = vrot.slane %v32_v16, 2 }
  0x87   :  { %v34_v18 = vadd.f32 %v33_v17, %v32_v16 }
  0x89   :  { %v35_v19 = vrot.slane %v34_v18, 1 }
  0x8b   :  { %v36_v20 = vadd.f32 %v35_v19, %v34_v18 }
  0x8d   :  { %70 = vpush %v36_v20 }
  0xb6   :  { %s69_s0 = spop %68 }
  0xb7   :  { %v38_v21 = vstv %s69_s0 }
  0xb8   :  { %75 = vrsqrt.f32 %v38_v21  ;;  %vm45_vm2 = vweird.f32 %v38_v21 }
  0xbe   :  { %v76_v22 = vpop.eup %75  ;;  %s71_s15 = spop %70 }
  0xbf   :  { %v40_v23 = vmul.f32 %v76_v22, %v38_v21  ;;  %vm46_vm1 = vweird.f32 %v76_v22 }
  0xc0   :  { %vm47_vm3 = vmor %vm45_vm2, %vm46_vm1 }
  0xc1   :  { %v41_v24 = vmul.f32 %v76_v22, %v40_v23 }
  0xc3   :  { %v42_v25 = vmul.f32 0.5, %v41_v24 }
  0xc5   :  { %v43_v26 = vsub.f32 1.5, %v42_v25 }
  0xc7   :  { %v44_v27 = vmul.f32 %v76_v22, %v43_v26 }
  0xc9   :  { %v48_v28 = vsel %vm47_vm3, %v76_v22, %v44_v27 }
  0xca   :  { %72 = vpush %v48_v28 }
  0xfb   :  { %s73_s16 = spop %72 }
  0xfc   :  { %s50_s17 = smul.f32 %s73_s16, %s71_s15 }
  0xfe   :  { %52 = sst [smem:[#allocation2]] %s50_s17 }
  0xff   :  { %61 = dma.smem_to_hbm %s91_s18, 16, %s59_s14, [#allocation3]  }
 0x100   :  { %89 = dma.done.wait [#allocation3], 16  }
 0x101   :  { %90 = vsyncadd [#allocation3], 4294967280 }
 0x102   :  { %66 = sfence }
 0x103   :  { %67 = vsyncpa [#allocation3], 1 }

</bundles_post_ra>
